<compile_context>
chip_gen: v5e
topology: v5e:2x2
jax: 0.10.0
libtpu: 0.0.40
codegen_flags: <defaults>
</compile_context>

<pallas_src>
import math

import jax
import jax.numpy as jnp
from jax.experimental import pallas as pl
from jax.experimental.pallas import tpu as pltpu


_LANE = 128            # TPU lane width (last dim)
_MAX_TD = 8192         # max column-tile width (elements)
_MAX_TM = 2048         # max row-tile height (rows)


def _round_up(v, m):
    return ((v + m - 1) // m) * m


def _sublane(dtype):
    # Packed (sublane, 128) tile height: f32 -> 8, bf16/f16 -> 16, int8/fp8 -> 32.
    return {4: 8, 2: 16, 1: 32}.get(jnp.dtype(dtype).itemsize, 8)


def _vmem_budgets():
    """Returns (tile_budget_bytes, vmem_limit_bytes, multi_tensorcore_chip)."""
    try:
        cap = int(pltpu.get_tpu_info().vmem_capacity_bytes)
    except Exception:
        cap = 64 * 1024 * 1024  # conservative fallback: v7x-style 64 MiB / TC
    if cap >= 128 * 1024 * 1024:
        # v5e / v6e: 128 MiB physical VMEM, single TensorCore per chip.
        return 64 * 1024 * 1024, 100 * 1024 * 1024, False
    # v7x: 64 MiB per TensorCore, 2 TensorCores per chip.
    return 32 * 1024 * 1024, 48 * 1024 * 1024, True


def _attentive_kernel(x_ref, w_ref, o_ref):
    # x @ diag(w) == x * w broadcast over rows -> pure VPU elementwise multiply.
    o_ref[...] = x_ref[...] * w_ref[...]


def _choose_tiles(n_rows, n_cols, dtype, tile_budget, multi_tc):
    itemsize = jnp.dtype(dtype).itemsize
    sub = _sublane(dtype)

    # Column tile: full D as a single block when it fits (legal even when
    # D % 128 != 0 -> no padding of x, at most masked stores on the final
    # <128 lanes).  For very wide D pick balanced 128-aligned tiles so the
    # masked tail is capped at <=127 columns instead of up to td-1.
    if n_cols <= _MAX_TD:
        td = n_cols
    else:
        d_pad = _round_up(n_cols, _LANE)
        n_col_tiles = pl.cdiv(d_pad, _MAX_TD)
        td = _round_up(pl.cdiv(d_pad, n_col_tiles), _LANE)

    # VMEM footprint ~= double-buffered x tile + out tile = 4 * tm * td.
    td_alloc = _round_up(td, _LANE)  # VMEM rounds the lane dim up anyway
    max_rows = max(1, tile_budget // (4 * td_alloc * itemsize))
    tm = max(sub, min(_MAX_TM, (max_rows // sub) * sub))

    if multi_tc:
        # Keep >= 2 row tiles (when N allows) so the leading "parallel" axis
        # can shard across the two TensorCores of a v7x chip.  Skipped on
        # single-TC chips where it would only shrink tiles / add grid steps.
        half_rows = _round_up(pl.cdiv(n_rows, 2), sub)
        tm = max(sub, min(tm, half_rows))

    # No point in a tile taller than the (sublane-rounded) array.
    tm = min(tm, max(sub, _round_up(n_rows, sub)))

    return tm, td, pl.cdiv(n_rows, tm), pl.cdiv(n_cols, td)


def _lane_dense_reshape(n_rows, n_cols):
    """If D % 128 != 0 and N*D is divisible by L = lcm(D, 128) (L small),
    return (rows, L, reps) for a lane-dense (N*D//L, L) view; else None."""
    if n_cols % _LANE == 0 or n_cols == 0 or n_rows == 0:
        return None
    L = (n_cols * _LANE) // math.gcd(n_cols, _LANE)
    if L > _MAX_TD:
        return None
    if (n_rows * n_cols) % L != 0:
        return None
    return (n_rows * n_cols) // L, L, L // n_cols


def attentive_forward(x, w):
    """Computes x @ diag(w) (per-column scaling of x by w) with a Pallas kernel.

    x: (N, D), w: (D,). Returns (N, D) with the dtype of x.
    """
    N, D = x.shape
    assert w.shape == (D,)

    # NOTE: w is cast to x.dtype before the multiply. Exact for f32; for bf16
    # inputs this quantizes the parameter first (PyTorch's x @ diag(w) needs
    # matching dtypes anyway).
    w_c = w.astype(x.dtype)

    reshaped = _lane_dense_reshape(N, D)
    if reshaped is not None:
        rows, L, reps = reshaped
        x_k = x.reshape(rows, L)      # free: contiguous row-major reshape
        w_k = jnp.tile(w_c, reps)     # tiny: L elements
        nk, dk = rows, L
    else:
        x_k, w_k = x, w_c
        nk, dk = N, D

    tile_budget, vmem_limit, multi_tc = _vmem_budgets()
    tm, td, m_grid, d_grid = _choose_tiles(nk, dk, x.dtype, tile_budget, multi_tc)

    itemsize = jnp.dtype(x.dtype).itemsize
    cost = pl.CostEstimate(
        flops=N * D,
        transcendentals=0,
        bytes_accessed=2 * N * D * itemsize + D * itemsize,
    )

    out = pl.pallas_call(
        _attentive_kernel,
        out_shape=jax.ShapeDtypeStruct((nk, dk), x.dtype),
        grid_spec=pltpu.PrefetchScalarGridSpec(
            num_scalar_prefetch=0,
            grid=(m_grid, d_grid),
            in_specs=[
                pl.BlockSpec((tm, td), lambda i, j: (i, j)),  # x row/col tile
                pl.BlockSpec((1, td), lambda i, j: (0, j)),   # w column slice
            ],
            out_specs=pl.BlockSpec((tm, td), lambda i, j: (i, j)),
        ),
        compiler_params=pltpu.CompilerParams(
            dimension_semantics=("parallel", "parallel"),
            vmem_limit_bytes=vmem_limit,
        ),
        cost_estimate=cost,
        # TODO(synk): if the caller can donate x, add input_output_aliases to
        # drop the separate output allocation (memory-footprint win only --
        # HBM traffic stays 1 read + 1 write either way).
    )(x_k, w_k.reshape(1, dk))

    if reshaped is not None:
        out = out.reshape(N, D)
    return out


if __name__ == "__main__":
    key = jax.random.PRNGKey(0)
    kx, kw, kx2, kw2 = jax.random.split(key, 4)

    # Primary small demo consistent with the module: x is (N, insize).
    # insize=96 exercises the lane-dense reshape path (lcm(96,128)=384).
    N, insize = 64, 96
    x = jax.random.normal(kx, (N, insize), dtype=jnp.float32)
    # Module initializes w to ones; perturb so the per-column scaling is real.
    w = jnp.ones((insize,), dtype=jnp.float32) + 0.1 * jax.random.normal(
        kw, (insize,), dtype=jnp.float32
    )

    out = jax.block_until_ready(attentive_forward(x, w))
    ref = jnp.matmul(x, jnp.diag(w), precision=jax.lax.Precision.HIGHEST)
    assert out.shape == ref.shape
    assert jnp.allclose(out, ref, atol=1e-6, rtol=1e-6), "mismatch vs reference"

    # Second check: odd N and D that hit the partial boundary-block path
    # (no padding, Pallas masks the edge tiles).
    N2, insize2 = 13, 130
    x2 = jax.random.normal(kx2, (N2, insize2), dtype=jnp.float32)
    w2 = jnp.ones((insize2,), dtype=jnp.float32) + 0.1 * jax.random.normal(
        kw2, (insize2,), dtype=jnp.float32
    )
    out2 = jax.block_until_ready(attentive_forward(x2, w2))
    ref2 = jnp.matmul(x2, jnp.diag(w2), precision=jax.lax.Precision.HIGHEST)
    assert out2.shape == ref2.shape
    assert jnp.allclose(out2, ref2, atol=1e-6, rtol=1e-6), "mismatch vs reference (2)"

    print("KERNEL_OK")
</pallas_src>

<mosaic_0001>
module attributes {stable_mosaic.version = 11 : i64} {
  func.func @_attentive_kernel(%arg0: i32, %arg1: i32, %arg2: memref<8x384xf32, #tpu.memory_space<vmem>>, %arg3: memref<1x384xf32, #tpu.memory_space<vmem>>, %arg4: memref<8x384xf32, #tpu.memory_space<vmem>>) attributes {dimension_semantics = [#tpu.dimension_semantics<parallel>, #tpu.dimension_semantics<parallel>], iteration_bounds = array<i64: 2, 1>, scalar_prefetch = 0 : i64, scratch_operands = 0 : i64, tpu.core_type = #tpu.core_type<tc>, window_params = [{transform_indices = @transform_0, window_bounds = array<i64: 8, 384>}, {transform_indices = @transform_1, window_bounds = array<i64: 1, 384>}, {transform_indices = @transform_2, window_bounds = array<i64: 8, 384>}]} {
    %c0 = arith.constant 0 : index
    %c0_0 = arith.constant 0 : index
    %0 = vector.load %arg2[%c0, %c0_0] : memref<8x384xf32, #tpu.memory_space<vmem>>, vector<8x384xf32>
    %c0_1 = arith.constant 0 : index
    %c0_2 = arith.constant 0 : index
    %1 = vector.load %arg3[%c0_1, %c0_2] : memref<1x384xf32, #tpu.memory_space<vmem>>, vector<1x384xf32>
    %2 = vector.broadcast %1 : vector<1x384xf32> to vector<8x384xf32>
    %3 = arith.mulf %0, %2 : vector<8x384xf32>
    %c0_3 = arith.constant 0 : index
    %c0_4 = arith.constant 0 : index
    %4 = vector.load %arg4[%c0_3, %c0_4] : memref<8x384xf32, #tpu.memory_space<vmem>>, vector<8x384xf32>
    tpu.vector_store %arg4[%c0_3, %c0_4], %3 {strides = array<i32>} : memref<8x384xf32, #tpu.memory_space<vmem>>, vector<8x384xf32>,
    return
  }
  func.func @transform_0(%arg0: i32, %arg1: i32) -> (i32, i32) {
    %c0_i32 = arith.constant 0 : i32
    return %arg0, %arg1 : i32, i32
  }
  func.func @transform_1(%arg0: i32, %arg1: i32) -> (i32, i32) {
    %c0_i32 = arith.constant 0 : i32
    %c0_i32_0 = arith.constant 0 : i32
    return %c0_i32, %arg1 : i32, i32
  }
  func.func @transform_2(%arg0: i32, %arg1: i32) -> (i32, i32) {
    %c0_i32 = arith.constant 0 : i32
    return %arg0, %arg1 : i32, i32
  }
}

</mosaic_0001>

<bundles_post_ra>
// kernel: tpu_custom_call.1
= control target key start
LH: loop header
LB: loop body
LE: loop exit
PB: predicated region body
PF: predicated region fallthrough
CT: control target
= control target key end

     0   :  { %7 = vsyncpa [#allocation3], 0  ;;  %s732_s0 = inlined_call_operand.hbm [shape: f32[16,384], index: 0, kind: input, shape index: {}]   ;;  %s733_s1 = inlined_call_operand.hbm [shape: f32[1,384], index: 1, kind: input, shape index: {}]   ;;  %s734_s2 = inlined_call_operand.hbm [shape: f32[16,384], index: 2, kind: output, shape index: {}]  }
   0x1   :  { %9 = vsyncpa [#allocation3 + $0x1], 0 }
   0x2   :  { %10 = vsyncpa [#allocation6], 0 }
   0x3   :  { %11 = vsyncpa [#allocation4], 0 }
   0x4   :  { %13 = vsyncpa [#allocation4 + $0x1], 0  ;;  %s589_s9 = smov 0   ;;  %s591_s10 = smov 0  }
   0x5   :  { %s593_s11 = smov 0   ;;  %s595_s12 = smov 0  }
   0x6   :  { %s597_s13 = smov 0   ;;  %s599_s14 = smov 0  }
   0x7 LB: > { %s337_s15 = sadd.s32 4294967295, %s571_s14   ;;  %s338_s16 = sadd.s32 4294967294, %s571_s14   ;;  %s571_s14 = sphi %s599_s14, %s19_s14   ;;  %s567_s13 = sphi %s597_s13, %s746_s13   ;;  %s563_s12 = sphi %s595_s12, %s745_s12   ;;  %s559_s11 = sphi %s593_s11, %s744_s11   ;;  %s555_s10 = sphi %s591_s10, %s743_s10   ;;  %s551_s9 = sphi %s589_s9, %s742_s9  }
   0x8   : > { %p53_p0 = scmp.ne.s32.totalorder %s555_s10, %s551_s9  ;;  %p623_p1 = scmp.eq.s32.totalorder %s337_s15, 0 }
   0x9   : > { %p627_p2 = scmp.eq.s32.totalorder %s337_s15, 1  ;;  %p111_p3 = scmp.eq.s32.totalorder %s338_s16, 1 }
   0xa   : > { %p633_p4 = por %p623_p1, %p53_p0  ;;  %p339_p5 = scmp.ge.s32.totalorder %s571_s14, 1 }
   0xb   : > { %p638_p6 = por %p111_p3, %p53_p0  ;;  %p118_p7 = scmp.lt.s32.totalorder %s571_s14, 3 }
   0xc   : > { %s132_s23 = sshll.u32 %s733_s1, 4  ;;  %s573_s25 = smov [#allocation5]   ;;  %s133_s23 = int_to_ptr.hbm [resolvable:$true] %s132_s23 }
   0xd   : > { %p646_p8 = pnand %p339_p5, %p118_p7  ;;  %s134_s26 = sshll.u32 %s573_s25, 4  ;;  %s135_s26 = int_to_ptr.vmem [resolvable:$true] %s134_s26 }
   0xe   : > { %s31_s27 = sadd.s32 1, %s567_s13  ;;  %s40_s28 = sadd.s32 1, %s559_s11 }
   0xf   : > { %p360_p10 = pneg %p646_p8  ;;  %p33_p12 = scmp.ge.s32.totalorder %s31_s27, 2 }
  0x10   : > { %p47_p13 = scmp.ne.s32.totalorder %s559_s11, %s555_s10  ;;  %p48_p0 = scmp.eq.s32.totalorder %s571_s14, 0 }
  0x11   : > { %p361_p11 = pnand %p360_p10, %p623_p1  ;;  %s748_s27 = smov (%p33_p12, %s31_s27), 0 }
  0x12   : > { %p49_p3 = por %p48_p0, %p47_p13  ;;  %p664_p5 = por %p627_p2, %p47_p13 }
  0x13   : > { %363 = dma.hbm_to_vmem [thread:$0]  (!%p361_p11), %s133_s23, 48, %s135_s26, [#allocation6]  }
  0x14   : > { %s35_s30 = ssub.s32 %s567_s13, %s748_s27  ;;  %p373_p7 = scmp.lt.s32.totalorder %s571_s14, 2 }
  0x15   : > { %p38_p9 = scmp.eq.s32.totalorder %s35_s30, 0  ;;  %s145_s3 = sand.u32 1, %s559_s11  }
  0x16   : > { %s348_s4 = smul.u32 24, %s145_s3  ;;  %p365_p10 = pnand %p373_p7, %p49_p3 }
  0x17   : > { %s673_s5 = scalar_select %p38_p9, %s559_s11, %s40_s28  }
  0x18   : > { %s349_s6 = smul.u32 24, %s567_s13  ;;  %s149_s7 = scalar_lea.vmem [#allocation2], %s348_s4 }
  0x19   : > { %s160_s8 = sshll.u32 %s149_s7, 4  ;;  %s146_s22 = scalar_lea.sflag [#allocation3], %s145_s3  ;;  %s161_s8 = int_to_ptr.vmem [resolvable:$true] %s160_s8 }
  0x1a   : > { %s156_s21 = scalar_lea.hbm %s732_s0, %s349_s6  ;;  %169 = sbr.rel (%p646_p8) target bundleno = 51 (0x33), region = 28 }
  0x1b   : > { %s158_s18 = sshll.u32 %s156_s21, 4  ;;  %s682_s23 = sand.u32 (!%p646_p8), 1, %s555_s10   ;;  %s159_s18 = int_to_ptr.hbm [resolvable:$true] %s158_s18 }
  0x1c   : > { %367 = dma.hbm_to_vmem [thread:$0]  (!%p365_p10), %s159_s18, 384, %s161_s8, %s146_s22  }
  0x1d   : > { %s350_s25 = smul.u32 (!%p646_p8), 24, %s682_s23  ;;  %s172_s26 = scalar_lea.sflag (!%p646_p8), [#allocation3], %s682_s23 }
  0x1f   : > { %s175_s28 = scalar_lea.vmem [#allocation2], %s350_s25 }
  0x20   : > { %538 = dma.done.wait (%p633_p4), %s172_s26, 384  }
  0x21   : > { %540 = vsyncadd (%p633_p4), %s172_s26, 4294966912 }
  0x22   : > { %542 = dma.done.wait (%p623_p1), [#allocation6], 48  }
  0x23   : > { %544 = vsyncadd (%p623_p1), [#allocation6], 4294967248  ;;  %s351_s24 = smul.u32 24, %s563_s12  ;;  %v205_v0 = vld [vmem:[%s175_s28] sm:$0xff]  ;;  %v208_v1 = vld [vmem:[#allocation5] sm:$0x7] }
  0x24   : > { %v206_v2 = vld [vmem:[%s175_s28 + $0x8] sm:$0xff]  ;;  %v210_v3 = vperm.slane %v208_v1, 0  ;;  %v211_v4 = vperm.slane %v208_v1, 1  ;;  %v207_v5 = vld [vmem:[%s175_s28 + $0x10] sm:$0xff]  ;;  %v212_v6 = vperm.slane %v208_v1, 2  ;;  %s201_s19 = scalar_lea.vmem [#allocation7], %s350_s25 }
  0x25   : > { %s236_s4 = scalar_lea.hbm %s734_s2, %s351_s24  ;;  %s238_s6 = sshll.u32 %s201_s19, 4  ;;  %s239_s6 = int_to_ptr.vmem [resolvable:$true] %s238_s6 }
  0x26   : > { %s240_s7 = sshll.u32 %s236_s4, 4  ;;  %v216_v7 = vmul.f32 %v210_v3, %v205_v0  ;;  %v217_v8 = vmul.f32 %v211_v4, %v206_v2  ;;  %v218_v9 = vmul.f32 %v212_v6, %v207_v5  ;;  %s223_s12 = scalar_lea.sflag [#allocation4], %s682_s23  ;;  %s241_s7 = int_to_ptr.hbm [resolvable:$true] %s240_s7 }
  0x27   : > { %s499_s17 = sshra.s32 %s241_s7, 4  ;;  %s505_s21 = scalar_lea.hbm %s734_s2, 48  ;;  %s500_s17 = int_to_ptr.hbm [resolvable:$true] %s499_s17 }
  0x28   : > { %219 = vst [vmem:[%s201_s19] sm:$0xff] %v216_v7  ;;  %s501_s8 = scalar_lea.hbm %s500_s17, 24  ;;  %p506_p8 = scmp.lt.s32.totalorder %s500_s17, %s734_s2 }
  0x29   : > { %220 = vst [vmem:[%s201_s19 + $0x8] sm:$0xff] %v217_v8  ;;  %p502_p1 = scmp.ne.s32.totalorder %s500_s17, %s501_s8  ;;  %p507_p9 = scmp.lt.s32.totalorder %s505_s21, %s501_s8 }
  0x2a   : > { %221 = vst [vmem:[%s201_s19 + $0x10] sm:$0xff] %v218_v9 }
  0x2b   : > { %p503_p2 = pnand %p502_p1, %p664_p5  ;;  %p508_p11 = por %p507_p9, %p506_p8 }
  0x2d   : > { %p504_p4 = pneg %p503_p2 }
  0x2f   : > { %p509_p12 = pnand %p508_p11, %p504_p4 }
  0x31   : > { %512 = shalt.err (!%p509_p12)
}
  0x32   : > { %358 = dma.vmem_to_hbm [thread:$0]  (%p664_p5), %s239_s6, 384, %s241_s7, %s223_s12  }
  0x33 PF: > { %s252_s23 = sand.u32 1, %s551_s9   ;;  %p741_p13 = scmp.ge.s32.totalorder %s571_s14, 2 }
  0x34   : > { %s253_s25 = scalar_lea.sflag [#allocation4], %s252_s23 }
  0x35   : > { %p369_p0 = pnand %p741_p13, %p638_p6 }
  0x37   : > { %p370_p3 = pneg %p369_p0 }
  0x39   : > { %546 = dma.done.wait (%p370_p3), %s253_s25, 384  }
  0x3a   : > { %548 = vsyncadd (%p370_p3), %s253_s25, 4294966912  ;;  %s19_s14 = sadd.s32 1, %s571_s14   ;;  %s742_s9 = smov %s555_s10 }
  0x3b   : > { %p16_p7 = scmp.ge.s32.totalorder %s19_s14, 4   ;;  %s743_s10 = smov %s559_s11 }
  0x3c   : > { %s744_s11 = smov %s673_s5  ;;  %s745_s12 = smov %s567_s13 }
  0x3d   : > { %s746_s13 = smov %s748_s27  ;;  %18 = sbr.rel (!%p16_p7) target bundleno = 7 (0x7), region = 78 }
  0x42   :  { %259 = vsyncpa [#allocation3], 1 }
  0x43   :  { %261 = vsyncpa [#allocation3 + $0x1], 1 }
  0x44   :  { %262 = vsyncpa [#allocation6], 1 }
  0x45   :  { %263 = vsyncpa [#allocation4], 1 }
  0x46   :  { %265 = vsyncpa [#allocation4 + $0x1], 1 }

</bundles_post_ra>
